<compile_context>
chip_gen: v7x
topology: tpu7x:2x2x1
jax: 0.10.0
libtpu: 0.0.40
codegen_flags: <defaults>
</compile_context>

<pallas_src>
import functools

import jax
import jax.numpy as jnp
from jax import lax
from jax.experimental import pallas as pl
from jax.experimental.pallas import tpu as pltpu


NUM_PARTIALS = 2  # one partial sum per TensorCore (v7x has 2 TCs; no-op elsewhere)


def _cdiv(a, b):
    return -(-a // b)


def _round_up(v, m):
    return ((v + m - 1) // m) * m


def _choose_tm(n):
    """Row-tile size: multiple of 8, capped so f32 temporaries stay ~<= 8 MiB."""
    tm = 512
    while tm > 8 and tm * n * 4 * 6 > (8 << 20):
        tm //= 2
    return min(tm, _round_up(n, 8))


def _max_margin_kernel(x_ref, dcol_ref, drow_ref, out_ref, acc_ref, *,
                       margin, n, tm, grid_rows):
    c = pl.program_id(0)          # partial (core) index            -- "parallel"
    i = pl.program_id(1)          # row-tile index within the core  -- "arbitrary"

    @pl.when(i == 0)
    def _():
        acc_ref[...] = jnp.zeros_like(acc_ref)

    x = x_ref[...].astype(jnp.float32)          # (tm, n)
    d_col = dcol_ref[...].astype(jnp.float32)   # (tm, 1): d_col[r, 0] = x[row r, row r]
    d_row = drow_ref[...].astype(jnp.float32)   # (1, n):  d_row[0, j] = x[j, j]

    # term1[r, j] = relu(margin - d_r + x[r, j])   (first cat half)
    # term2[r, j] = relu(margin - d_j + x[r, j])   (transposed half, re-indexed)
    term = (jnp.maximum(margin - d_col + x, 0.0) +
            jnp.maximum(margin - d_row + x, 0.0))

    # Lane-axis reduce only; cross-sublane reduce is deferred to the finalize.
    row_sums = jnp.sum(term, axis=1, keepdims=True)             # (tm, 1)

    # Mask rows outside the real matrix (tile padding / clamped overflow steps).
    tile_idx = c * grid_rows + i
    row_ids = tile_idx * tm + lax.broadcasted_iota(jnp.int32, (tm, 1), 0)
    acc_ref[...] += jnp.where(row_ids < n, row_sums, 0.0)

    @pl.when(i == grid_rows - 1)
    def _():
        total = jnp.sum(acc_ref[...])                           # one cross-sublane reduce
        out_ref[...] = jnp.zeros(out_ref.shape, jnp.float32) + total


def max_margin_ranking_loss(x, margin=1.0, *, tm=None):
    """Pallas implementation of MaxMarginRankingLoss(margin, fix_norm=True)."""
    assert x.ndim == 2 and x.shape[0] == x.shape[1], "x must be a square (n, n) matrix"
    n = x.shape[0]
    assert n >= 2, "need at least 2 items (mean over off-diagonal pairs)"
    margin = float(margin)

    tm = _choose_tm(n) if tm is None else tm
    total_tiles = _cdiv(n, tm)
    grid_rows = _cdiv(total_tiles, NUM_PARTIALS)

    # Precompute the diagonal once in the wrapper (O(n)); keep native dtype.
    d = jnp.diagonal(x)
    d_col = d.reshape(n, 1)
    d_row = d.reshape(1, n)

    def row_block(c, i):
        # Clamp so overflow steps of the core split never DMA out of bounds;
        # their rows are masked to zero inside the kernel.
        return (jnp.minimum(c * grid_rows + i, total_tiles - 1), 0)

    kernel = functools.partial(_max_margin_kernel, margin=margin, n=n,
                               tm=tm, grid_rows=grid_rows)

    partials = pl.pallas_call(
        kernel,
        out_shape=jax.ShapeDtypeStruct((NUM_PARTIALS, 8, 128), jnp.float32),
        grid_spec=pltpu.PrefetchScalarGridSpec(
            num_scalar_prefetch=0,
            grid=(NUM_PARTIALS, grid_rows),
            in_specs=[
                pl.BlockSpec((tm, n), row_block),             # x row slab (native dtype)
                pl.BlockSpec((tm, 1), row_block),             # diagonal, column form
                pl.BlockSpec((1, n), lambda c, i: (0, 0)),    # diagonal, row form
            ],
            out_specs=pl.BlockSpec((1, 8, 128), lambda c, i: (c, 0, 0)),
            scratch_shapes=[pltpu.VMEM((tm, 1), jnp.float32)],
        ),
        compiler_params=pltpu.CompilerParams(
            dimension_semantics=("parallel", "arbitrary")),
    )(x, d_col, d_row)

    total = jnp.sum(partials[:, 0, 0])
    # At i == j both halves reduce to relu(margin); subtract analytically.
    diag_contribution = 2.0 * n * max(margin, 0.0)
    count = 2.0 * n * (n - 1)
    return (total - diag_contribution) / count


def _reference_loss(x, margin=1.0):
    # Pure-JAX reference mirroring the PyTorch forward (for verification).
    n = x.shape[0]
    d = jnp.diag(x)
    x1 = jnp.broadcast_to(d[:, None], (n, n)).reshape(-1)
    x1 = jnp.concatenate([x1, x1], axis=0)
    x2 = jnp.concatenate([x.reshape(-1), x.T.reshape(-1)], axis=0)
    max_margin = jnp.maximum(margin - (x1 - x2), 0.0)
    keep = (1.0 - jnp.eye(n)).reshape(-1)
    keep = jnp.concatenate([keep, keep], axis=0)
    return jnp.sum(max_margin * keep) / jnp.sum(keep)


if __name__ == "__main__":
    # MaxMarginRankingLoss has no learnable parameters; margin=1, fix_norm=True.
    key = jax.random.PRNGKey(0)

    # (n, forced_tm) cases: default tiling, row-padding (n not multiple of 8),
    # and a multi-tile / uneven-core-split case (total_tiles=5 over 2 partials).
    cases = [(8, None), (13, None), (40, 8)]
    for n, forced_tm in cases:
        key, sub = jax.random.split(key)
        x = jax.random.normal(sub, (n, n), dtype=jnp.float32)

        loss = max_margin_ranking_loss(x, margin=1.0, tm=forced_tm)
        loss = jax.block_until_ready(loss)

        ref = _reference_loss(x, margin=1.0)
        assert jnp.allclose(loss, ref, rtol=1e-5, atol=1e-5), (n, loss, ref)

    print("KERNEL_OK")
</pallas_src>

<mosaic_0001>
module attributes {stable_mosaic.version = 11 : i64} {
  func.func @_max_margin_kernel(%arg0: i32, %arg1: i32, %arg2: memref<8x8xf32, #tpu.memory_space<vmem>>, %arg3: memref<8x1xf32, #tpu.memory_space<vmem>>, %arg4: memref<1x8xf32, #tpu.memory_space<vmem>>, %arg5: memref<1x8x128xf32, #tpu.memory_space<vmem>>, %arg6: memref<8x1xf32, #tpu.memory_space<vmem>>) attributes {dimension_semantics = [#tpu.dimension_semantics<parallel>, #tpu.dimension_semantics<arbitrary>], iteration_bounds = array<i64: 2, 1>, scalar_prefetch = 0 : i64, scratch_operands = 1 : i64, tpu.core_type = #tpu.core_type<tc>, window_params = [{transform_indices = @transform_0, window_bounds = array<i64: 8, 8>}, {transform_indices = @transform_1, window_bounds = array<i64: 8, 1>}, {pipeline_mode = #tpu.pipeline_mode<synchronous>, transform_indices = @transform_2, window_bounds = array<i64: 1, 8>}, {transform_indices = @transform_3, window_bounds = array<i64: 1, 8, 128>}]} {
    %c0_i32 = arith.constant 0 : i32
    %0 = arith.cmpi eq, %arg1, %c0_i32 : i32
    %1 = arith.extui %0 : i1 to i32
    %c0_i32_0 = arith.constant 0 : i32
    %2 = arith.cmpi ne, %1, %c0_i32_0 : i32
    scf.if %2 {
      %cst_18 = arith.constant 0.000000e+00 : f32
      %37 = vector.broadcast %cst_18 : f32 to vector<8x1xf32>
      %c0_19 = arith.constant 0 : index
      %c0_20 = arith.constant 0 : index
      %38 = vector.load %arg6[%c0_19, %c0_20] : memref<8x1xf32, #tpu.memory_space<vmem>>, vector<8x1xf32>
      tpu.vector_store %arg6[%c0_19, %c0_20], %37 {strides = array<i32>} : memref<8x1xf32, #tpu.memory_space<vmem>>, vector<8x1xf32>,
    } else {
    }
    %c0 = arith.constant 0 : index
    %c0_1 = arith.constant 0 : index
    %3 = vector.load %arg2[%c0, %c0_1] : memref<8x8xf32, #tpu.memory_space<vmem>>, vector<8x8xf32>
    %c0_2 = arith.constant 0 : index
    %c0_3 = arith.constant 0 : index
    %4 = vector.load %arg3[%c0_2, %c0_3] : memref<8x1xf32, #tpu.memory_space<vmem>>, vector<8x1xf32>
    %c0_4 = arith.constant 0 : index
    %c0_5 = arith.constant 0 : index
    %5 = vector.load %arg4[%c0_4, %c0_5] : memref<1x8xf32, #tpu.memory_space<vmem>>, vector<1x8xf32>
    %cst = arith.constant 1.000000e+00 : f32
    %6 = vector.broadcast %cst : f32 to vector<8x1xf32>
    %7 = arith.subf %6, %4 : vector<8x1xf32>
    %8 = vector.broadcast %7 : vector<8x1xf32> to vector<8x8xf32>
    %9 = arith.addf %8, %3 : vector<8x8xf32>
    %cst_6 = arith.constant 0.000000e+00 : f32
    %10 = vector.broadcast %cst_6 : f32 to vector<8x8xf32>
    %11 = arith.maximumf %9, %10 : vector<8x8xf32>
    %cst_7 = arith.constant 1.000000e+00 : f32
    %12 = vector.broadcast %cst_7 : f32 to vector<1x8xf32>
    %13 = arith.subf %12, %5 : vector<1x8xf32>
    %14 = vector.broadcast %13 : vector<1x8xf32> to vector<8x8xf32>
    %15 = arith.addf %14, %3 : vector<8x8xf32>
    %cst_8 = arith.constant 0.000000e+00 : f32
    %16 = vector.broadcast %cst_8 : f32 to vector<8x8xf32>
    %17 = arith.maximumf %15, %16 : vector<8x8xf32>
    %18 = arith.addf %11, %17 : vector<8x8xf32>
    %cst_9 = arith.constant dense<0.000000e+00> : vector<8xf32>
    %19 = vector.multi_reduction <add>, %18, %cst_9 [1] : vector<8x8xf32> to vector<8xf32>
    %20 = vector.shape_cast %19 : vector<8xf32> to vector<8x1xf32>
    %c1_i32 = arith.constant 1 : i32
    %21 = arith.muli %arg0, %c1_i32 : i32
    %22 = arith.addi %21, %arg1 : i32
    %c8_i32 = arith.constant 8 : i32
    %23 = arith.muli %22, %c8_i32 : i32
    %24 = tpu.iota {dimensions = array<i32: 0>} : vector<8x1xi32>
    %25 = vector.broadcast %23 : i32 to vector<8x1xi32>
    %26 = arith.addi %25, %24 : vector<8x1xi32>
    %c0_10 = arith.constant 0 : index
    %c0_11 = arith.constant 0 : index
    %27 = vector.load %arg6[%c0_10, %c0_11] : memref<8x1xf32, #tpu.memory_space<vmem>>, vector<8x1xf32>
    %c8_i32_12 = arith.constant 8 : i32
    %28 = vector.broadcast %c8_i32_12 : i32 to vector<8x1xi32>
    %29 = arith.cmpi slt, %26, %28 : vector<8x1xi32>
    %cst_13 = arith.constant 0.000000e+00 : f32
    %30 = vector.broadcast %cst_13 : f32 to vector<8x1xf32>
    %31 = arith.select %29, %20, %30 : vector<8x1xi1>, vector<8x1xf32>
    %32 = arith.addf %27, %31 : vector<8x1xf32>
    %c0_14 = arith.constant 0 : index
    %c0_15 = arith.constant 0 : index
    %33 = vector.load %arg6[%c0_14, %c0_15] : memref<8x1xf32, #tpu.memory_space<vmem>>, vector<8x1xf32>
    tpu.vector_store %arg6[%c0_14, %c0_15], %32 {strides = array<i32>} : memref<8x1xf32, #tpu.memory_space<vmem>>, vector<8x1xf32>,
    %c0_i32_16 = arith.constant 0 : i32
    %34 = arith.cmpi eq, %arg1, %c0_i32_16 : i32
    %35 = arith.extui %34 : i1 to i32
    %c0_i32_17 = arith.constant 0 : i32
    %36 = arith.cmpi ne, %35, %c0_i32_17 : i32
    scf.if %36 {
      %c0_18 = arith.constant 0 : index
      %c0_19 = arith.constant 0 : index
      %37 = vector.load %arg6[%c0_18, %c0_19] : memref<8x1xf32, #tpu.memory_space<vmem>>, vector<8x1xf32>
      %38 = vector.shape_cast %37 : vector<8x1xf32> to vector<1x8x1xf32>
      %cst_20 = arith.constant dense<0.000000e+00> : vector<1xf32>
      %39 = vector.multi_reduction <add>, %38, %cst_20 [1, 2] : vector<1x8x1xf32> to vector<1xf32>
      %40 = vector.shape_cast %39 : vector<1xf32> to vector<1x1x1xf32>
      %41 = vector.extract %40[0, 0, 0] : f32 from vector<1x1x1xf32>
      %cst_21 = arith.constant 0.000000e+00 : f32
      %42 = vector.broadcast %cst_21 : f32 to vector<1x8x128xf32>
      %43 = vector.broadcast %41 : f32 to vector<1x8x128xf32>
      %44 = arith.addf %42, %43 : vector<1x8x128xf32>
      %c0_22 = arith.constant 0 : index
      %c0_23 = arith.constant 0 : index
      %c0_24 = arith.constant 0 : index
      %45 = vector.load %arg5[%c0_22, %c0_23, %c0_24] : memref<1x8x128xf32, #tpu.memory_space<vmem>>, vector<1x8x128xf32>
      tpu.vector_store %arg5[%c0_22, %c0_23, %c0_24], %44 {strides = array<i32>} : memref<1x8x128xf32, #tpu.memory_space<vmem>>, vector<1x8x128xf32>,
    } else {
    }
    return
  }
  func.func @transform_0(%arg0: i32, %arg1: i32) -> (i32, i32) {
    %c1_i32 = arith.constant 1 : i32
    %0 = arith.muli %arg0, %c1_i32 : i32
    %1 = arith.addi %0, %arg1 : i32
    %c0_i32 = arith.constant 0 : i32
    %2 = arith.minsi %1, %c0_i32 : i32
    %c0_i32_0 = arith.constant 0 : i32
    %c0_i32_1 = arith.constant 0 : i32
    return %2, %c0_i32_0 : i32, i32
  }
  func.func @transform_1(%arg0: i32, %arg1: i32) -> (i32, i32) {
    %c1_i32 = arith.constant 1 : i32
    %0 = arith.muli %arg0, %c1_i32 : i32
    %1 = arith.addi %0, %arg1 : i32
    %c0_i32 = arith.constant 0 : i32
    %2 = arith.minsi %1, %c0_i32 : i32
    %c0_i32_0 = arith.constant 0 : i32
    %c0_i32_1 = arith.constant 0 : i32
    return %2, %c0_i32_0 : i32, i32
  }
  func.func @transform_2(%arg0: i32, %arg1: i32) -> (i32, i32) {
    %c0_i32 = arith.constant 0 : i32
    %c0_i32_0 = arith.constant 0 : i32
    %c0_i32_1 = arith.constant 0 : i32
    return %c0_i32, %c0_i32_0 : i32, i32
  }
  func.func @transform_3(%arg0: i32, %arg1: i32) -> (i32, i32, i32) {
    %c0_i32 = arith.constant 0 : i32
    %c0_i32_0 = arith.constant 0 : i32
    %c0_i32_1 = arith.constant 0 : i32
    return %arg0, %c0_i32, %c0_i32_0 : i32, i32, i32
  }
}

</mosaic_0001>

<bundles_post_ra>
// kernel: tpu_custom_call.1
= control target key start
LH: loop header
LB: loop body
LE: loop exit
PB: predicated region body
PF: predicated region fallthrough
CT: control target
= control target key end

     0   :  { %8 = vsyncpa [#allocation4], 0  ;;  %s694_s0 = inlined_call_operand.vmem [shape: f32[8,8], index: 0, kind: input, shape index: {}]   ;;  %s695_s1 = inlined_call_operand.vmem [shape: f32[8,1], index: 1, kind: input, shape index: {}]   ;;  %s696_s2 = inlined_call_operand.vmem [shape: f32[1,8], index: 2, kind: input, shape index: {}]   ;;  %s697_s3 = inlined_call_operand.hbm [shape: f32[2,8,128], index: 3, kind: output, shape index: {}]  }
   0x1   :  { %10 = vsyncpa [#allocation4 + $0x1], 0  ;;  %s572_s12 = smov 0   ;;  %s574_s13 = smov 0  }
   0x2   :  { %s576_s14 = smov 0   ;;  %s578_s15 = smov 0  }
   0x3   :  { %s580_s16 = smov 0   ;;  %s582_s17 = smov 0  }
   0x4 LB: > { %s390_s18 = sadd.s32 4294967295, %s547_s17   ;;  %s391_s19 = sadd.s32 4294967294, %s547_s17   ;;  %s547_s17 = sphi %s582_s17, %s16_s17   ;;  %s543_s16 = sphi %s580_s16, %s704_s16   ;;  %s539_s15 = sphi %s578_s15, %s703_s15   ;;  %s535_s14 = sphi %s576_s14, %s702_s14   ;;  %s531_s13 = sphi %s574_s13, %s701_s13   ;;  %s527_s12 = sphi %s572_s12, %s700_s12  }
   0x5   : > { %s28_s20 = sadd.s32 1, %s543_s16  ;;  %s120_s21 = sadd.s32 1, %s535_s14 }
   0x6   : > { %p30_p0 = scmp.ge.s32.totalorder %s28_s20, 2  ;;  %p130_p1 = scmp.ne.s32.totalorder %s535_s14, %s531_s13 }
   0x7   : > { %p131_p2 = scmp.eq.s32.totalorder %s390_s18, 1  ;;  %p136_p3 = scmp.ne.s32.totalorder %s531_s13, %s527_s12 }
   0x8   : > { %s706_s20 = smov (%p30_p0, %s28_s20), 0  ;;  %p137_p5 = scmp.eq.s32.totalorder %s391_s19, 1 }
   0x9   : > { %p612_p4 = por %p131_p2, %p130_p1  ;;  %s117_s23 = ssub.s32 %s543_s16, %s706_s20 }
   0xa   : > { %p394_p6 = scmp.ge.s32.totalorder %s547_s17, 1  ;;  %p118_p7 = scmp.eq.s32.totalorder %s117_s23, 0 }
   0xb   : > { %p619_p8 = por %p137_p5, %p136_p3  ;;  %p184_p9 = scmp.lt.s32.totalorder %s547_s17, 3 }
   0xc   : > { %s625_s25 = scalar_select %p118_p7, %s535_s14, %s120_s21  }
   0xd   : > { %p185_p10 = pnand %p394_p6, %p184_p9 }
   0xe   : > { %p218_p11 = scmp.lt.s32.totalorder (!%p185_p10), %s539_s15, 0  ;;  %v549_v0 = vmov (!%p185_p10), 0   ;;  %vm241_vm0 = vcmask (!%p185_p10), 7168   ;;  %v550_v3 = vmov (!%p185_p10), 0.0   ;;  %v256_v4 = vlaneseq (!%p185_p10)  ;;  %v245_v6 = vld [vmem:[%s696_s2] sm:$0x1] (!%p185_p10) }
   0xf   : > { %188 = sbr.rel (%p185_p10) target bundleno = 538 (0x21a), region = 32  ;;  %468 = vset.pattern.permute.xlu0 (!%p185_p10), %v549_v0  ;;  %242 = vst.msk [vmem:[#allocation2] sm:$0xff] (!%p185_p10), %vm241_vm0, %v550_v3  ;;  %v254_v7 = vsub.f32 (!%p185_p10), 1.0, %v245_v6  ;;  %vm264_vm1 = vcmask (!%p185_p10), 64512   ;;  %s404_s9 = sshll.u32 (!%p185_p10), %s539_s15, 3 }
  0x10   : > { %v257_v5 = vshrl.u32 (!%p185_p10), %v256_v4, 7  ;;  %v272_v18 = vstv (!%p185_p10), %s404_s9  ;;  %s214_s10 = sand.u32 (!%p185_p10), 1, %s531_s13   ;;  %s406_s21 = sshll.u32 (!%p185_p10), %s539_s15, 7 }
  0x11   : > { %s395_s11 = sshll.u32 (!%p185_p10), %s214_s10, 3  ;;  %s649_s28 = scalar_lea.hbm (!%p185_p10), %s697_s3, %s406_s21 }
  0x12   : > { %v258_v8 = vsub.s32 (!%p185_p10), 0, %v257_v5  ;;  %v273_v19 = vadd.s32 (!%p185_p10), %v272_v18, %v257_v5  ;;  %s216_s18 = scalar_lea.vmem (!%p185_p10), [#allocation3], %s395_s11  ;;  %s298_s29 = scalar_lea.sflag (!%p185_p10), [#allocation4], %s214_s10 }
  0x13   : > { %s311_s19 = sshll.u32 (!%p185_p10), %s216_s18, 4  ;;  %s644_s19 = int_to_ptr.vmem [resolvable:$true] %s311_s19 }
  0x14   : > { %v259_v9 = vrot.slane (!%p185_p10), %v254_v7, %v258_v8  ;;  %vm275_vm2 = vcmp.lt.s32.totalorder (!%p185_p10), %v273_v19, 8 }
  0x16   : > { %s219_s26 = scalar_select %p218_p11, %s539_s15, 0  ;;  %v274_v20 = vld [vmem:[#allocation2] sm:$0xff] }
  0x17   : > { %s551_s15 = smov [#allocation3]  }
  0x18   : > { %s708_s26 = smov (!%p218_p11, %s219_s26), 0  ;;  %s473_s4 = sshll.u32 %s551_s15, 4  ;;  %s474_s4 = int_to_ptr.vmem [resolvable:$false] %s473_s4 }
  0x19   : > { %s399_s27 = sshll.u32 %s708_s26, 3  ;;  %s475_s5 = scalar_lea.vmem %s474_s4, 256 }
  0x1a   : > { %s233_s30 = scalar_lea.vmem %s695_s1, %s399_s27  ;;  %s223_s8 = scalar_lea.vmem %s694_s0, %s399_s27 }
  0x1b   : > { %v244_v1 = vld [vmem:[%s233_s30] sm:$0xff]  ;;  %s469_s30 = scalar_lea.vmem %s644_s19, 128  ;;  %p476_p1 = scmp.lt.s32.totalorder %s644_s19, %s474_s4 }
  0x1c   : > { %v246_v2 = vsub.f32 1.0, %v244_v1  ;;  %v243_v10 = vld [vmem:[%s223_s8] sm:$0xff]  ;;  %p470_p12 = scmp.ne.s32.totalorder %s644_s19, %s469_s30  ;;  %p477_p2 = scmp.lt.s32.totalorder %s475_s5, %s469_s30 }
  0x1d   : > { %v261_v11 = vadd.f32 %v259_v9, %v243_v10 }
  0x1e   : > { %249 = vperm.xlu0 %468, %v246_v2   ;;  %p471_p13 = pnand %p470_p12, %p612_p4  ;;  %p478_p3 = por %p477_p2, %p476_p1 }
  0x1f   : > { %v262_v14 = vmax.f32 %v261_v11, 0.0 }
  0x20   : > { %p472_p0 = pneg %p471_p13 }
  0x22   : > { %p479_p5 = pnand %p478_p3, %p472_p0 }
  0x9d   : > { %v250_v12 = vpop.permute.xlu0 %249 }
  0x9e   : > { %v252_v13 = vadd.f32 %v250_v12, %v243_v10 }
  0xa0   : > { %v253_v15 = vmax.f32 %v252_v13, 0.0 }
  0xa2   : > { %v263_v16 = vadd.f32 %v262_v14, %v253_v15 }
  0xa4   : > { %v265_v17 = vsel %vm264_vm1, %v263_v16, 0.0 }
  0xa5   : > { %266 = vadd.xlane.f32.xlu0 %v265_v17 }
 0x132   : > { %v267_v21 = vpop.xlane.xlu0 %266 }
 0x133   : > { %v276_v22 = vsel %vm275_vm2, %v267_v21, 0.0 }
 0x134   : > { %v277_v23 = vadd.f32 %v276_v22, %v274_v20 }
 0x136   : > { %279 = vst.msk [vmem:[#allocation2] sm:$0xff] %vm241_vm0, %v277_v23 }
 0x13d   : > { %v283_v24 = vld [vmem:[#allocation2] sm:$0xff] }
 0x13e   : > { %v284_v25 = vsel %vm241_vm0, %v283_v24, 0.0 }
 0x13f   : > { %285 = vadd.xlane.f32.xlu1 %v284_v25 }
 0x1cc   : > { %v286_v26 = vpop.xlane.xlu1 %285 }
 0x1cd   : > { %v287_v27 = vrot.slane %v286_v26, 4 }
 0x1cf   : > { %v288_v28 = vadd.f32 %v287_v27, %v286_v26 }
 0x1d1   : > { %v289_v29 = vrot.slane %v288_v28, 2 }
 0x1d3   : > { %v290_v30 = vadd.f32 %v289_v29, %v288_v28 }
 0x1d5   : > { %v291_v31 = vrot.slane %v290_v30, 1 }
 0x1d7   : > { %v292_v32 = vadd.f32 %v291_v31, %v290_v30 }
 0x1d9   : > { %409 = vpush %v292_v32 }
 0x20a   : > { %s410_s23 = spop %409 }
 0x20b   : > { %v294_v33 = vstv %s410_s23 }
 0x20c   : > { %296 = vst [vmem:[%s216_s18] sm:$0xff] %v294_v33 }
 0x20d   : > { %482 = shalt.err (!%p479_p5)
}
 0x20e   : > { %s483_s6 = scalar_lea.hbm %s649_s28, 128  ;;  %s487_s9 = scalar_lea.hbm %s697_s3, 256 }
 0x20f   : > { %p484_p6 = scmp.ne.s32.totalorder %s649_s28, %s483_s6  ;;  %p488_p10 = scmp.lt.u32.totalorder %s649_s28, %s697_s3 }
 0x210   : > { %p489_p11 = scmp.lt.u32.totalorder %s487_s9, %s483_s6  ;;  %p491_p13 = scmp.lt.u32.totalorder %s483_s6, %s649_s28 }
 0x211   : > { %p485_p7 = pnand %p484_p6, %p612_p4 }
 0x212   : > { %p490_p12 = por %p489_p11, %p488_p10 }
 0x213   : > { %p486_p9 = pneg %p485_p7 }
 0x214   : > { %p492_p0 = por %p491_p13, %p490_p12 }
 0x216   : > { %p493_p1 = pnand %p492_p0, %p486_p9 }
 0x218   : > { %496 = shalt.err (!%p493_p1)
}
 0x219   : > { %411 = dma.vmem_to_hbm [thread:$0]  (%p612_p4), %s644_s19, 128, %s649_s28, %s298_s29  }
 0x21a PF: > { %p417_p2 = scmp.ge.s32.totalorder %s547_s17, 2  ;;  %s323_s18 = sand.u32 1, %s527_s12  }
 0x21b   : > { %s324_s21 = scalar_lea.sflag [#allocation4], %s323_s18 }
 0x21c   : > { %p414_p3 = pnand %p417_p2, %p619_p8 }
 0x21e   : > { %522 = dma.done.wait (!%p414_p3), %s324_s21, 128  }
 0x21f   : > { %524 = vsyncadd (!%p414_p3), %s324_s21, 4294967168  ;;  %s16_s17 = sadd.s32 1, %s547_s17   ;;  %s700_s12 = smov %s531_s13 }
 0x220   : > { %p13_p5 = scmp.ge.s32.totalorder %s16_s17, 4   ;;  %s701_s13 = smov %s535_s14 }
 0x221   : > { %s702_s14 = smov %s625_s25  ;;  %s703_s15 = smov %s543_s16 }
 0x222   : > { %s704_s16 = smov %s706_s20  ;;  %15 = sbr.rel (!%p13_p5) target bundleno = 4 (0x4), region = 78 }
 0x229   :  { %329 = vsyncpa [#allocation4], 1 }
 0x22a   :  { %331 = vsyncpa [#allocation4 + $0x1], 1 }

</bundles_post_ra>
